<compile_context>
chip_gen: v6e
topology: v6e:2x2x1
jax: 0.10.0
libtpu: 0.0.40
codegen_flags: <defaults>
</compile_context>

<pallas_src>
import jax
import jax.numpy as jnp
from jax import lax
from jax.experimental import pallas as pl
from jax.experimental.pallas import tpu as pltpu

HID1, HID2 = 512, 256


def reward_fc_kernel(z_ref, w1_ref, b1_ref, w2_ref, b2_ref, w3_ref, b3_ref, o_ref):
    # Layer 1: (bm, z) bf16 @ (z, 512) bf16 -> f32 accumulate; bias + ReLU in f32 (VPU).
    h1 = jnp.dot(z_ref[...], w1_ref[...], preferred_element_type=jnp.float32)
    h1 = jnp.maximum(h1 + b1_ref[...], 0.0)

    # Layer 2: bf16 inputs, f32 accumulate; bias + ReLU in f32.
    h2 = jnp.dot(h1.astype(jnp.bfloat16), w2_ref[...],
                 preferred_element_type=jnp.float32)
    h2 = jnp.maximum(h2 + b2_ref[...], 0.0)

    # Layer 3: W3 as a lane-dense (1,256) row, contracted against h2's feature axis
    # ("NT" dimension numbers, same pattern as flash-attention q@k^T).  Result is a
    # lane-major (1, bm) row -> lane-dense store.  b3 is a scalar read from SMEM.
    logits = lax.dot_general(w3_ref[...], h2, (((1,), (1,)), ((), ())),
                             preferred_element_type=jnp.float32)
    logits = logits + b3_ref[0, 0]
    o_ref[...] = jax.nn.sigmoid(logits).astype(o_ref.dtype)


def reward_fc(z, params, *, bm=None):
    """Fused MLP forward.  z: (B, z_dim) float32.  Returns (B, 1) float32."""
    w1, b1, w2, b2, w3, b3 = params
    B, z_dim = z.shape
    h1n, h2n, h3n = w1.shape[1], w2.shape[1], w3.shape[1]
    assert h3n == 1

    if bm is None:
        # Single grid step for small batches; 256-row tiles (full MXU M on v6e/v7x) beyond.
        bm = B if B <= 256 else 256
    assert B % bm == 0, "batch must be a multiple of the batch tile"
    if bm != B:
        assert bm % 8 == 0, "batch tile must be a multiple of 8 sublanes"
    num_tiles = B // bm

    # bf16 feeds for the two big matmuls (DMA + MXU win); accumulation stays in f32.
    z_b = z.astype(jnp.bfloat16)
    w1_b = w1.astype(jnp.bfloat16)
    w2_b = w2.astype(jnp.bfloat16)
    w3_row = jnp.transpose(w3)                    # (1, 256) lane-dense row
    b3_s = b3.reshape(1, 1).astype(jnp.float32)   # scalar bias, lives in SMEM

    full = lambda shape: pl.BlockSpec(shape, lambda i: (0, 0))

    cost = pl.CostEstimate(
        flops=2 * B * (z_dim * h1n + h1n * h2n + h2n * h3n),
        transcendentals=B,  # sigmoid
        bytes_accessed=(z_b.size * 2 + w1_b.size * 2 + w2_b.size * 2
                        + (b1.size + b2.size + w3_row.size + 1 + B) * 4),
    )

    out = pl.pallas_call(
        reward_fc_kernel,
        out_shape=jax.ShapeDtypeStruct((num_tiles, bm), jnp.float32),
        grid_spec=pltpu.PrefetchScalarGridSpec(
            num_scalar_prefetch=0,
            grid=(num_tiles,),
            in_specs=[
                pl.BlockSpec((bm, z_dim), lambda i: (i, 0)),        # z tile (bf16)
                full((z_dim, h1n)),                                 # W1 (bf16)
                full((1, h1n)),                                     # b1 (f32)
                full((h1n, h2n)),                                   # W2 (bf16)
                full((1, h2n)),                                     # b2 (f32)
                full((1, h2n)),                                     # W3 row (f32)
                pl.BlockSpec(memory_space=pltpu.MemorySpace.SMEM),  # b3 scalar
            ],
            out_specs=pl.BlockSpec((1, bm), lambda i: (i, 0)),      # lane-dense row per tile
        ),
        compiler_params=pltpu.CompilerParams(
            dimension_semantics=("parallel",),
        ),
        cost_estimate=cost,
    )(z_b, w1_b, b1, w2_b, b2, w3_row, b3_s)

    return out.reshape(B, 1)


def init_params(key, z_dim):
    """Deterministic init; weights stored transposed vs nn.Linear: (in, out)."""
    dims = [(z_dim, HID1), (HID1, HID2), (HID2, 1)]
    params = []
    for i, (din, dout) in enumerate(dims):
        kw, kb = jax.random.split(jax.random.fold_in(key, i))
        bound = 1.0 / (din ** 0.5)  # PyTorch default Linear init range
        w = jax.random.uniform(kw, (din, dout), jnp.float32, -bound, bound)
        b = jax.random.uniform(kb, (1, dout), jnp.float32, -bound, bound)
        params += [w, b]
    return tuple(params)


def reward_fc_reference_f32(z, params):
    w1, b1, w2, b2, w3, b3 = params
    h1 = jnp.maximum(z @ w1 + b1, 0.0)
    h2 = jnp.maximum(h1 @ w2 + b2, 0.0)
    return jax.nn.sigmoid(h2 @ w3 + b3)


def reward_fc_reference_bf16(z, params):
    """Pure-JAX reference using the same bf16-input / f32-accumulate recipe as the kernel."""
    w1, b1, w2, b2, w3, b3 = params
    h1 = jnp.dot(z.astype(jnp.bfloat16), w1.astype(jnp.bfloat16),
                 preferred_element_type=jnp.float32) + b1
    h1 = jnp.maximum(h1, 0.0)
    h2 = jnp.dot(h1.astype(jnp.bfloat16), w2.astype(jnp.bfloat16),
                 preferred_element_type=jnp.float32) + b2
    h2 = jnp.maximum(h2, 0.0)
    return jax.nn.sigmoid(h2 @ w3 + b3)


if __name__ == "__main__":
    key = jax.random.PRNGKey(0)
    B, Z_DIM = 16, 128  # small shapes; hidden sizes (512, 256, 1) fixed by the module

    kz, kp = jax.random.split(key)
    z = jax.random.normal(kz, (B, Z_DIM), jnp.float32)
    params = init_params(kp, Z_DIM)

    out = reward_fc(z, params)          # grid collapses to a single step at B=16
    out = jax.block_until_ready(out)
    assert out.shape == (B, 1)

    ref_match = reward_fc_reference_bf16(z, params)   # same bf16/f32 recipe
    ref_f32 = reward_fc_reference_f32(z, params)      # full-precision module semantics
    assert jnp.allclose(out, ref_match, atol=1e-3, rtol=1e-3), "mismatch vs bf16-matched reference"
    assert jnp.allclose(out, ref_f32, atol=3e-2), "mismatch vs f32 reference"

    print("KERNEL_OK")
</pallas_src>

<mosaic_0001>
module attributes {stable_mosaic.version = 11 : i64} {
  func.func @reward_fc_kernel(%arg0: i32, %arg1: memref<16x128xbf16, #tpu.memory_space<vmem>>, %arg2: memref<128x512xbf16, #tpu.memory_space<vmem>>, %arg3: memref<1x512xf32, #tpu.memory_space<vmem>>, %arg4: memref<512x256xbf16, #tpu.memory_space<vmem>>, %arg5: memref<1x256xf32, #tpu.memory_space<vmem>>, %arg6: memref<1x256xf32, #tpu.memory_space<vmem>>, %arg7: memref<1x1xf32, #tpu.memory_space<smem>>, %arg8: memref<1x16xf32, #tpu.memory_space<vmem>>) attributes {dimension_semantics = [#tpu.dimension_semantics<parallel>], iteration_bounds = array<i64: 1>, scalar_prefetch = 0 : i64, scratch_operands = 0 : i64, tpu.core_type = #tpu.core_type<tc>, window_params = [{transform_indices = @transform_0, window_bounds = array<i64: 16, 128>}, {pipeline_mode = #tpu.pipeline_mode<synchronous>, transform_indices = @transform_1, window_bounds = array<i64: 128, 512>}, {pipeline_mode = #tpu.pipeline_mode<synchronous>, transform_indices = @transform_2, window_bounds = array<i64: 1, 512>}, {pipeline_mode = #tpu.pipeline_mode<synchronous>, transform_indices = @transform_3, window_bounds = array<i64: 512, 256>}, {pipeline_mode = #tpu.pipeline_mode<synchronous>, transform_indices = @transform_4, window_bounds = array<i64: 1, 256>}, {pipeline_mode = #tpu.pipeline_mode<synchronous>, transform_indices = @transform_5, window_bounds = array<i64: 1, 256>}, {transform_indices = @transform_6, window_bounds = array<i64: 1, 1>}, {transform_indices = @transform_7, window_bounds = array<i64: 1, 16>}]} {
    %c0 = arith.constant 0 : index
    %c0_0 = arith.constant 0 : index
    %0 = vector.load %arg1[%c0, %c0_0] : memref<16x128xbf16, #tpu.memory_space<vmem>>, vector<16x128xbf16>
    %c0_1 = arith.constant 0 : index
    %c0_2 = arith.constant 0 : index
    %1 = vector.load %arg2[%c0_1, %c0_2] : memref<128x512xbf16, #tpu.memory_space<vmem>>, vector<128x512xbf16>
    %cst = arith.constant dense<0.000000e+00> : vector<16x512xf32>
    %2 = tpu.matmul %0, %1, %cst {dimension_numbers = #tpu.dot_dimension_numbers<[1], [0], [0], [1], [0, 0, 1, 1], [], []>} : vector<16x128xbf16>, vector<128x512xbf16>, vector<16x512xf32> -> vector<16x512xf32>
    %c0_3 = arith.constant 0 : index
    %c0_4 = arith.constant 0 : index
    %3 = vector.load %arg3[%c0_3, %c0_4] : memref<1x512xf32, #tpu.memory_space<vmem>>, vector<1x512xf32>
    %4 = vector.broadcast %3 : vector<1x512xf32> to vector<16x512xf32>
    %5 = arith.addf %2, %4 : vector<16x512xf32>
    %cst_5 = arith.constant 0.000000e+00 : f32
    %6 = vector.broadcast %cst_5 : f32 to vector<16x512xf32>
    %7 = arith.maximumf %5, %6 : vector<16x512xf32>
    %8 = arith.truncf %7 : vector<16x512xf32> to vector<16x512xbf16>
    %c0_6 = arith.constant 0 : index
    %c0_7 = arith.constant 0 : index
    %9 = vector.load %arg4[%c0_6, %c0_7] : memref<512x256xbf16, #tpu.memory_space<vmem>>, vector<512x256xbf16>
    %cst_8 = arith.constant dense<0.000000e+00> : vector<16x256xf32>
    %10 = tpu.matmul %8, %9, %cst_8 {dimension_numbers = #tpu.dot_dimension_numbers<[1], [0], [0], [1], [0, 0, 1, 1], [], []>} : vector<16x512xbf16>, vector<512x256xbf16>, vector<16x256xf32> -> vector<16x256xf32>
    %c0_9 = arith.constant 0 : index
    %c0_10 = arith.constant 0 : index
    %11 = vector.load %arg5[%c0_9, %c0_10] : memref<1x256xf32, #tpu.memory_space<vmem>>, vector<1x256xf32>
    %12 = vector.broadcast %11 : vector<1x256xf32> to vector<16x256xf32>
    %13 = arith.addf %10, %12 : vector<16x256xf32>
    %cst_11 = arith.constant 0.000000e+00 : f32
    %14 = vector.broadcast %cst_11 : f32 to vector<16x256xf32>
    %15 = arith.maximumf %13, %14 : vector<16x256xf32>
    %c0_12 = arith.constant 0 : index
    %c0_13 = arith.constant 0 : index
    %16 = vector.load %arg6[%c0_12, %c0_13] : memref<1x256xf32, #tpu.memory_space<vmem>>, vector<1x256xf32>
    %cst_14 = arith.constant dense<0.000000e+00> : vector<1x16xf32>
    %17 = tpu.matmul %16, %15, %cst_14 {dimension_numbers = #tpu.dot_dimension_numbers<[1], [1], [0], [0], [0, 0, 1, 0], [], []>} : vector<1x256xf32>, vector<16x256xf32>, vector<1x16xf32> -> vector<1x16xf32>
    %c0_15 = arith.constant 0 : index
    %c0_16 = arith.constant 0 : index
    %18 = memref.load %arg7[%c0_15, %c0_16] : memref<1x1xf32, #tpu.memory_space<smem>>
    %19 = vector.broadcast %18 : f32 to vector<1x16xf32>
    %20 = arith.addf %17, %19 : vector<1x16xf32>
    %21 = arith.negf %20 : vector<1x16xf32>
    %22 = math.exp %21 : vector<1x16xf32>
    %cst_17 = arith.constant 1.000000e+00 : f32
    %23 = vector.broadcast %cst_17 : f32 to vector<1x16xf32>
    %24 = arith.addf %23, %22 : vector<1x16xf32>
    %25 = arith.divf %23, %24 : vector<1x16xf32>
    %c0_18 = arith.constant 0 : index
    %c0_19 = arith.constant 0 : index
    %26 = vector.load %arg8[%c0_18, %c0_19] : memref<1x16xf32, #tpu.memory_space<vmem>>, vector<1x16xf32>
    tpu.vector_store %arg8[%c0_18, %c0_19], %25 {strides = array<i32>} : memref<1x16xf32, #tpu.memory_space<vmem>>, vector<1x16xf32>,
    return
  }
  func.func @transform_0(%arg0: i32) -> (i32, i32) {
    %c0_i32 = arith.constant 0 : i32
    %c0_i32_0 = arith.constant 0 : i32
    return %arg0, %c0_i32 : i32, i32
  }
  func.func @transform_1(%arg0: i32) -> (i32, i32) {
    %c0_i32 = arith.constant 0 : i32
    %c0_i32_0 = arith.constant 0 : i32
    %c0_i32_1 = arith.constant 0 : i32
    return %c0_i32, %c0_i32_0 : i32, i32
  }
  func.func @transform_2(%arg0: i32) -> (i32, i32) {
    %c0_i32 = arith.constant 0 : i32
    %c0_i32_0 = arith.constant 0 : i32
    %c0_i32_1 = arith.constant 0 : i32
    return %c0_i32, %c0_i32_0 : i32, i32
  }
  func.func @transform_3(%arg0: i32) -> (i32, i32) {
    %c0_i32 = arith.constant 0 : i32
    %c0_i32_0 = arith.constant 0 : i32
    %c0_i32_1 = arith.constant 0 : i32
    return %c0_i32, %c0_i32_0 : i32, i32
  }
  func.func @transform_4(%arg0: i32) -> (i32, i32) {
    %c0_i32 = arith.constant 0 : i32
    %c0_i32_0 = arith.constant 0 : i32
    %c0_i32_1 = arith.constant 0 : i32
    return %c0_i32, %c0_i32_0 : i32, i32
  }
  func.func @transform_5(%arg0: i32) -> (i32, i32) {
    %c0_i32 = arith.constant 0 : i32
    %c0_i32_0 = arith.constant 0 : i32
    %c0_i32_1 = arith.constant 0 : i32
    return %c0_i32, %c0_i32_0 : i32, i32
  }
  func.func @transform_6(%arg0: i32) -> (i32, i32) {
    %c0_i32 = arith.constant 0 : i32
    %c0_i32_0 = arith.constant 0 : i32
    %c0_i32_1 = arith.constant 0 : i32
    return %c0_i32, %c0_i32_0 : i32, i32
  }
  func.func @transform_7(%arg0: i32) -> (i32, i32) {
    %c0_i32 = arith.constant 0 : i32
    %c0_i32_0 = arith.constant 0 : i32
    return %arg0, %c0_i32 : i32, i32
  }
}

</mosaic_0001>

<bundles_post_ra>
// kernel: tpu_custom_call.1
= control target key start
LH: loop header
LB: loop body
LE: loop exit
PB: predicated region body
PF: predicated region fallthrough
CT: control target
= control target key end

     0   :  { %13 = vsyncpa [#allocation4], 0  ;;  %s1408_s0 = inlined_call_operand.hbm [shape: bf16[16,128], index: 0, kind: input, shape index: {}]   ;;  %s1409_s1 = inlined_call_operand.hbm [shape: bf16[128,512], index: 1, kind: input, shape index: {}]   ;;  %s1410_s2 = inlined_call_operand.vmem [shape: f32[1,512], index: 2, kind: input, shape index: {}]   ;;  %s1411_s3 = inlined_call_operand.hbm [shape: bf16[512,256], index: 3, kind: input, shape index: {}]   ;;  %s1412_s4 = inlined_call_operand.vmem [shape: f32[1,256], index: 4, kind: input, shape index: {}]   ;;  %s1413_s5 = inlined_call_operand.vmem [shape: f32[1,256], index: 5, kind: input, shape index: {}]   ;;  %s1414_s6 = inlined_call_operand.<no memory space> [shape: f32[1,1], index: 6, kind: input, shape index: {}]   ;;  %s1415_s7 = inlined_call_operand.hbm [shape: f32[1,16], index: 7, kind: output, shape index: {}]  }
   0x1   :  { %14 = vsyncpa [#allocation7], 0 }
   0x2   :  { %15 = vsyncpa [#allocation5], 0  ;;  %s1328_s24 = smov [#allocation6]  }
   0x3   :  { %s33_s25 = sshll.u32 %s1328_s24, 4  ;;  %s34_s25 = int_to_ptr.vmem [resolvable:$true] %s33_s25 }
   0x4   :  { %s1250_s26 = scalar_lea.vmem %s34_s25, 4096  ;;  %p1255_p1 = scmp.lt.s32.totalorder %s34_s25, %s34_s25 }
   0x5   :  { %p1251_p0 = scmp.ne.s32.totalorder %s34_s25, %s1250_s26  ;;  %p1256_p2 = scmp.lt.s32.totalorder %s1250_s26, %s1250_s26 }
   0x7   :  { %p1257_p3 = por %p1256_p2, %p1255_p1 }
   0x9   :  { %p1258_p4 = pnand %p1257_p3, %p1251_p0 }
   0xb   :  { %1261 = shalt.err (!%p1258_p4)
}
   0xc   :  { %s1329_s27 = smov 256   ;;  %s1330_s28 = smov 16  }
   0xd   :  { %39 = dma.hbm_to_vmem [thread:$0]  %s1409_s1, 4096, %s34_s25, [#allocation7], %s1329_s27, %s1329_s27, %s1330_s28  }
   0xe   :  { %s1331_s8 = smov [#allocation3]  }
   0xf   :  { %s21_s9 = sshll.u32 %s1331_s8, 4  ;;  %s22_s9 = int_to_ptr.vmem [resolvable:$true] %s21_s9 }
  0x10   :  { %s1270_s10 = scalar_lea.vmem %s22_s9, 128  ;;  %p1275_p6 = scmp.lt.s32.totalorder %s22_s9, %s22_s9 }
  0x11   :  { %p1271_p5 = scmp.ne.s32.totalorder %s22_s9, %s1270_s10  ;;  %p1276_p7 = scmp.lt.s32.totalorder %s1270_s10, %s1270_s10 }
  0x13   :  { %p1277_p8 = por %p1276_p7, %p1275_p6 }
  0x15   :  { %p1278_p9 = pnand %p1277_p8, %p1271_p5 }
  0x17   :  { %1281 = shalt.err (!%p1278_p9)
}
  0x18   :  { %s1332_s11 = smov 64   ;;  %s1333_s12 = smov 4  }
  0x19   :  { %27 = dma.hbm_to_vmem [thread:$0]  %s1408_s0, 128, %s22_s9, [#allocation4], %s1332_s11, %s1332_s11, %s1333_s12  }
  0x1a   :  { %s1334_s15 = smov [#allocation8]  }
  0x1b   :  { %s47_s16 = sshll.u32 %s1334_s15, 4  ;;  %s48_s16 = int_to_ptr.vmem [resolvable:$true] %s47_s16 }
  0x1c   :  { %s1290_s1 = scalar_lea.vmem %s48_s16, 8192  ;;  %p1295_p11 = scmp.lt.s32.totalorder %s48_s16, %s48_s16 }
  0x1d   :  { %p1291_p10 = scmp.ne.s32.totalorder %s48_s16, %s1290_s1  ;;  %p1296_p12 = scmp.lt.s32.totalorder %s1290_s1, %s1290_s1 }
  0x1f   :  { %p1297_p13 = por %p1296_p12, %p1295_p11 }
  0x21   :  { %p1298_p0 = pnand %p1297_p13, %p1291_p10 }
  0x23   :  { %1301 = shalt.err (!%p1298_p0)
}
  0x24   :  { %s1335_s17 = smov 128   ;;  %s1336_s18 = smov 8  }
  0x25   :  { %53 = dma.hbm_to_vmem [thread:$0]  %s1411_s3, 8192, %s48_s16, [#allocation7], %s1335_s17, %s1335_s17, %s1336_s18  }
  0x26   :  { %1322 = dma.done.wait [#allocation4], 128  }
  0x27   :  { %1323 = vsyncadd [#allocation4], 4294967168 }
  0x28   :  { %1324 = dma.done.wait [#allocation7], 12288  }
  0x29   :  { %1325 = vsyncadd [#allocation7], 4294955008  ;;  %v1337_v0 = vmov 0   ;;  %v1093_v1 = vld [vmem:[#allocation6 + $0xe4] ss:$16 sps:$4 sm:$0xff]   ;;  %v1141_v35 = vld [vmem:[#allocation3] sm:$0xff]  }
  0x2a   :  { %324 = vmatprep.mubr.bf16.mxu0 %v1337_v0  ;;  %367 = vmatprep.mubr.bf16.mxu1 %v1337_v0  ;;  %v1095_v2 = vld [vmem:[#allocation6 + $0xec] ss:$16 sps:$4 sm:$0xff]   ;;  %v1097_v3 = vld [vmem:[#allocation6 + $0xe0] ss:$16 sps:$4 sm:$0xff]   ;;  %v1098_v4 = vld [vmem:[#allocation6 + $0xe8] ss:$16 sps:$4 sm:$0xff]  }
  0x2b   :  { %292 = vmatprep.subr.bf16.mxu0 %v1093_v1  ;;  %335 = vmatprep.subr.bf16.mxu1 %v1095_v2  ;;  %v1099_v5 = vld [vmem:[#allocation6 + $0xc4] ss:$16 sps:$4 sm:$0xff]   ;;  %v1101_v6 = vld [vmem:[#allocation6 + $0xcc] ss:$16 sps:$4 sm:$0xff]   ;;  %v1103_v7 = vld [vmem:[#allocation6 + $0xc0] ss:$16 sps:$4 sm:$0xff]  }
  0x2c   :  { %293 = vmatpush1.bf16.msra.mxu0 %v1097_v3  ;;  %336 = vmatpush1.bf16.msra.mxu1 %v1098_v4  ;;  %v1104_v8 = vld [vmem:[#allocation6 + $0xc8] ss:$16 sps:$4 sm:$0xff]   ;;  %v1105_v9 = vld [vmem:[#allocation6 + $0xa4] ss:$16 sps:$4 sm:$0xff]   ;;  %v1107_v10 = vld [vmem:[#allocation6 + $0xac] ss:$16 sps:$4 sm:$0xff]  }
  0x2d   :  { %294 = vmatprep.subr.bf16.mxu0 %v1099_v5  ;;  %337 = vmatprep.subr.bf16.mxu1 %v1101_v6  ;;  %v1109_v11 = vld [vmem:[#allocation6 + $0xa0] ss:$16 sps:$4 sm:$0xff]   ;;  %v1110_v12 = vld [vmem:[#allocation6 + $0xa8] ss:$16 sps:$4 sm:$0xff]   ;;  %v1111_v13 = vld [vmem:[#allocation6 + $0x84] ss:$16 sps:$4 sm:$0xff]  }
  0x2e   :  { %v1113_v14 = vld [vmem:[#allocation6 + $0x8c] ss:$16 sps:$4 sm:$0xff]   ;;  %v1115_v15 = vld [vmem:[#allocation6 + $0x80] ss:$16 sps:$4 sm:$0xff]   ;;  %v1116_v16 = vld [vmem:[#allocation6 + $0x88] ss:$16 sps:$4 sm:$0xff]  }
  0x2f   :  { %v1117_v17 = vld [vmem:[#allocation6 + $0x64] ss:$16 sps:$4 sm:$0xff]   ;;  %v1119_v18 = vld [vmem:[#allocation6 + $0x6c] ss:$16 sps:$4 sm:$0xff]   ;;  %v1121_v19 = vld [vmem:[#allocation6 + $0x60] ss:$16 sps:$4 sm:$0xff]  }
  0x30   :  { %295 = vmatpush1.bf16.msra.mxu0 %v1103_v7  ;;  %338 = vmatpush1.bf16.msra.mxu1 %v1104_v8  ;;  %v1122_v20 = vld [vmem:[#allocation6 + $0x68] ss:$16 sps:$4 sm:$0xff]   ;;  %v1123_v21 = vld [vmem:[#allocation6 + $0x44] ss:$16 sps:$4 sm:$0xff]   ;;  %v1125_v22 = vld [vmem:[#allocation6 + $0x4c] ss:$16 sps:$4 sm:$0xff]  }
  0x31   :  { %296 = vmatprep.subr.bf16.mxu0 %v1105_v9  ;;  %339 = vmatprep.subr.bf16.mxu1 %v1107_v10  ;;  %v1127_v23 = vld [vmem:[#allocation6 + $0x40] ss:$16 sps:$4 sm:$0xff]   ;;  %v1128_v24 = vld [vmem:[#allocation6 + $0x48] ss:$16 sps:$4 sm:$0xff]   ;;  %v1129_v25 = vld [vmem:[#allocation6 + $0x24] ss:$16 sps:$4 sm:$0xff]  }
  0x32   :  { %v1131_v26 = vld [vmem:[#allocation6 + $0x2c] ss:$16 sps:$4 sm:$0xff]   ;;  %v1133_v27 = vld [vmem:[#allocation6 + $0x20] ss:$16 sps:$4 sm:$0xff]   ;;  %v1134_v28 = vld [vmem:[#allocation6 + $0x28] ss:$16 sps:$4 sm:$0xff]  }
  0x33   :  { %v1135_v29 = vld [vmem:[#allocation6 + $0x4] ss:$16 sps:$4 sm:$0xff]   ;;  %v1137_v30 = vld [vmem:[#allocation6 + $0xc] ss:$16 sps:$4 sm:$0xff]   ;;  %v1139_v31 = vld [vmem:[#allocation6] ss:$16 sps:$4 sm:$0xff]  }
  0x34   :  { %297 = vmatpush1.bf16.msra.mxu0 %v1109_v11  ;;  %340 = vmatpush1.bf16.msra.mxu1 %v1110_v12  ;;  %v1140_v32 = vld [vmem:[#allocation6 + $0x8] ss:$16 sps:$4 sm:$0xff]   ;;  %v1144_v33 = vld [vmem:[#allocation8 + $0x74] ss:$8 sps:$4 sm:$0xff]   ;;  %v1150_v38 = vld [vmem:[#allocation8 + $0x64] ss:$8 sps:$4 sm:$0xff]  }
  0x35   :  { %298 = vmatprep.subr.bf16.mxu0 %v1111_v13  ;;  %341 = vmatprep.subr.bf16.mxu1 %v1113_v14  ;;  %v1147_v34 = vld [vmem:[#allocation8 + $0x174] ss:$8 sps:$4 sm:$0xff]   ;;  %v1142_v36 = vld [vmem:[#allocation8 + $0x70] ss:$8 sps:$4 sm:$0xff]   ;;  %v1153_v39 = vld [vmem:[#allocation8 + $0x164] ss:$8 sps:$4 sm:$0xff]  }
  0x36   :  { %v1145_v37 = vld [vmem:[#allocation8 + $0x170] ss:$8 sps:$4 sm:$0xff]   ;;  %v1148_v40 = vld [vmem:[#allocation8 + $0x60] ss:$8 sps:$4 sm:$0xff]   ;;  %v1156_v42 = vld [vmem:[#allocation8 + $0x54] ss:$8 sps:$4 sm:$0xff]  }
  0x37   :  { %v1151_v41 = vld [vmem:[#allocation8 + $0x160] ss:$8 sps:$4 sm:$0xff]   ;;  %v1159_v43 = vld [vmem:[#allocation8 + $0x154] ss:$8 sps:$4 sm:$0xff]   ;;  %v1154_v44 = vld [vmem:[#allocation8 + $0x50] ss:$8 sps:$4 sm:$0xff]  }
  0x38   :  { %299 = vmatpush1.bf16.msra.mxu0 %v1115_v15  ;;  %342 = vmatpush1.bf16.msra.mxu1 %v1116_v16  ;;  %v1157_v45 = vld [vmem:[#allocation8 + $0x150] ss:$8 sps:$4 sm:$0xff]   ;;  %v1162_v46 = vld [vmem:[#allocation8 + $0x44] ss:$8 sps:$4 sm:$0xff]   ;;  %v1160_v48 = vld [vmem:[#allocation8 + $0x40] ss:$8 sps:$4 sm:$0xff]  }
  0x39   :  { %300 = vmatprep.subr.bf16.mxu0 %v1117_v17  ;;  %343 = vmatprep.subr.bf16.mxu1 %v1119_v18  ;;  %v1165_v47 = vld [vmem:[#allocation8 + $0x144] ss:$8 sps:$4 sm:$0xff]   ;;  %v1163_v49 = vld [vmem:[#allocation8 + $0x140] ss:$8 sps:$4 sm:$0xff]   ;;  %v1168_v50 = vld [vmem:[#allocation8 + $0x34] ss:$8 sps:$4 sm:$0xff]  }
  0x3a   :  { %v1171_v51 = vld [vmem:[#allocation8 + $0x134] ss:$8 sps:$4 sm:$0xff]   ;;  %v1166_v52 = vld [vmem:[#allocation8 + $0x30] ss:$8 sps:$4 sm:$0xff]   ;;  %v1174_v54 = vld [vmem:[#allocation8 + $0x24] ss:$8 sps:$4 sm:$0xff]  }
  0x3b   :  { %v1169_v53 = vld [vmem:[#allocation8 + $0x130] ss:$8 sps:$4 sm:$0xff]   ;;  %v1177_v55 = vld [vmem:[#allocation8 + $0x124] ss:$8 sps:$4 sm:$0xff]   ;;  %v1172_v56 = vld [vmem:[#allocation8 + $0x20] ss:$8 sps:$4 sm:$0xff]  }
  0x3c   :  { %301 = vmatpush1.bf16.msra.mxu0 %v1121_v19  ;;  %344 = vmatpush1.bf16.msra.mxu1 %v1122_v20  ;;  %v1175_v57 = vld [vmem:[#allocation8 + $0x120] ss:$8 sps:$4 sm:$0xff]   ;;  %v1180_v58 = vld [vmem:[#allocation8 + $0x14] ss:$8 sps:$4 sm:$0xff]   ;;  %v1178_v60 = vld [vmem:[#allocation8 + $0x10] ss:$8 sps:$4 sm:$0xff]  }
  0x3d   :  { %302 = vmatprep.subr.bf16.mxu0 %v1123_v21  ;;  %345 = vmatprep.subr.bf16.mxu1 %v1125_v22  ;;  %v1183_v59 = vld [vmem:[#allocation8 + $0x114] ss:$8 sps:$4 sm:$0xff]   ;;  %v1181_v61 = vld [vmem:[#allocation8 + $0x110] ss:$8 sps:$4 sm:$0xff]   ;;  %v1186_v62 = vld [vmem:[#allocation8 + $0x4] ss:$8 sps:$4 sm:$0xff]  }
  0x3e   :  { %v1189_v63 = vld [vmem:[#allocation8 + $0x104] ss:$8 sps:$4 sm:$0xff]   ;;  %v1184_v0 = vld [vmem:[#allocation8] ss:$8 sps:$4 sm:$0xff]   ;;  %v1192_v2 = vld [vmem:[#allocation8 + $0xf4] ss:$8 sps:$4 sm:$0xff]  }
  0x3f   :  { %v1187_v1 = vld [vmem:[#allocation8 + $0x100] ss:$8 sps:$4 sm:$0xff]   ;;  %v1195_v3 = vld [vmem:[#allocation8 + $0x1f4] ss:$8 sps:$4 sm:$0xff]   ;;  %v1190_v4 = vld [vmem:[#allocation8 + $0xf0] ss:$8 sps:$4 sm:$0xff]  }
  0x40   :  { %303 = vmatpush1.bf16.msra.mxu0 %v1127_v23  ;;  %346 = vmatpush1.bf16.msra.mxu1 %v1128_v24  ;;  %v1193_v5 = vld [vmem:[#allocation8 + $0x1f0] ss:$8 sps:$4 sm:$0xff]   ;;  %v1198_v6 = vld [vmem:[#allocation8 + $0xe4] ss:$8 sps:$4 sm:$0xff]   ;;  %v1196_v8 = vld [vmem:[#allocation8 + $0xe0] ss:$8 sps:$4 sm:$0xff]  }
  0x41   :  { %304 = vmatprep.subr.bf16.mxu0 %v1129_v25  ;;  %347 = vmatprep.subr.bf16.mxu1 %v1131_v26  ;;  %v1201_v7 = vld [vmem:[#allocation8 + $0x1e4] ss:$8 sps:$4 sm:$0xff]   ;;  %v1199_v9 = vld [vmem:[#allocation8 + $0x1e0] ss:$8 sps:$4 sm:$0xff]   ;;  %v1204_v10 = vld [vmem:[#allocation8 + $0xd4] ss:$8 sps:$4 sm:$0xff]  }
  0x42   :  { %v1207_v11 = vld [vmem:[#allocation8 + $0x1d4] ss:$8 sps:$4 sm:$0xff]   ;;  %v1202_v12 = vld [vmem:[#allocation8 + $0xd0] ss:$8 sps:$4 sm:$0xff]   ;;  %v1210_v14 = vld [vmem:[#allocation8 + $0xc4] ss:$8 sps:$4 sm:$0xff]  }
  0x43   :  { %v1205_v13 = vld [vmem:[#allocation8 + $0x1d0] ss:$8 sps:$4 sm:$0xff]   ;;  %v1213_v15 = vld [vmem:[#allocation8 + $0x1c4] ss:$8 sps:$4 sm:$0xff]   ;;  %v1208_v16 = vld [vmem:[#allocation8 + $0xc0] ss:$8 sps:$4 sm:$0xff]  }
  0x44   :  { %305 = vmatpush1.bf16.msra.mxu0 %v1133_v27  ;;  %348 = vmatpush1.bf16.msra.mxu1 %v1134_v28  ;;  %v1211_v17 = vld [vmem:[#allocation8 + $0x1c0] ss:$8 sps:$4 sm:$0xff]   ;;  %v1216_v18 = vld [vmem:[#allocation8 + $0xb4] ss:$8 sps:$4 sm:$0xff]   ;;  %v1214_v20 = vld [vmem:[#allocation8 + $0xb0] ss:$8 sps:$4 sm:$0xff]  }
  0x45   :  { %306 = vmatprep.subr.bf16.mxu0 %v1135_v29  ;;  %349 = vmatprep.subr.bf16.mxu1 %v1137_v30  ;;  %v1219_v19 = vld [vmem:[#allocation8 + $0x1b4] ss:$8 sps:$4 sm:$0xff]   ;;  %v1217_v21 = vld [vmem:[#allocation8 + $0x1b0] ss:$8 sps:$4 sm:$0xff]   ;;  %v1222_v22 = vld [vmem:[#allocation8 + $0xa4] ss:$8 sps:$4 sm:$0xff]  }
  0x46   :  { %v1225_v23 = vld [vmem:[#allocation8 + $0x1a4] ss:$8 sps:$4 sm:$0xff]   ;;  %v1220_v24 = vld [vmem:[#allocation8 + $0xa0] ss:$8 sps:$4 sm:$0xff]   ;;  %v1228_v26 = vld [vmem:[#allocation8 + $0x94] ss:$8 sps:$4 sm:$0xff]  }
  0x47   :  { %v1223_v25 = vld [vmem:[#allocation8 + $0x1a0] ss:$8 sps:$4 sm:$0xff]   ;;  %v1231_v27 = vld [vmem:[#allocation8 + $0x194] ss:$8 sps:$4 sm:$0xff]   ;;  %v1226_v28 = vld [vmem:[#allocation8 + $0x90] ss:$8 sps:$4 sm:$0xff]  }
  0x48   :  { %307 = vmatpush1.bf16.msra.mxu0 %v1139_v31  ;;  %350 = vmatpush1.bf16.msra.mxu1 %v1140_v32  ;;  %v1229_v29 = vld [vmem:[#allocation8 + $0x190] ss:$8 sps:$4 sm:$0xff]   ;;  %v1234_v30 = vld [vmem:[#allocation8 + $0x84] ss:$8 sps:$4 sm:$0xff]   ;;  %v1232_v32 = vld [vmem:[#allocation8 + $0x80] ss:$8 sps:$4 sm:$0xff]  }
  0x49   :  { %786 = vmatprep.subr.bf16.mxu0 %v1144_v33  ;;  %829 = vmatprep.subr.bf16.mxu1 %v1147_v34  ;;  %v1237_v31 = vld [vmem:[#allocation8 + $0x184] ss:$8 sps:$4 sm:$0xff]   ;;  %v1235_v33 = vld [vmem:[#allocation8 + $0x180] ss:$8 sps:$4 sm:$0xff]   ;;  %v106_v34 = vlaneseq  ;;  %s1338_s24 = smov [#allocation9]   ;;  %vm966_vm0 = vcmask 122880  }
  0x4a   :  { %s974_s25 = sshll.u32 %s1338_s24, 4  ;;  %s975_s25 = int_to_ptr.vmem [resolvable:$true] %s974_s25 }
  0x4b   :  { %325 = vmatmul.mubr.bf16.vlgmr.msra.gmra.mxu0 %v1141_v35  ;;  %368 = vmatmul.mubr.bf16.vlgmr.msra.gmra.mxu1 %v1141_v35  ;;  %v107_v35 = vshrl.u32 %v106_v34, 7  ;;  %s1302_s26 = scalar_lea.vmem %s975_s25, 16  ;;  %s1306_s27 = scalar_lea.vmem %s975_s25, 32 }
  0x4c   :  { %787 = vmatpush1.bf16.msra.mxu0 %v1142_v36  ;;  %830 = vmatpush1.bf16.msra.mxu1 %v1145_v37  ;;  %p1303_p1 = scmp.ne.s32.totalorder %s975_s25, %s1302_s26  ;;  %p1307_p2 = scmp.lt.s32.totalorder %s975_s25, %s975_s25 }
  0x4d   :  { %788 = vmatprep.subr.bf16.mxu0 %v1150_v38  ;;  %831 = vmatprep.subr.bf16.mxu1 %v1153_v39  ;;  %v112_v36 = vsub.s32 1, %v107_v35  ;;  %v120_v37 = vsub.s32 3, %v107_v35  ;;  %v1388_v38 = vsub.s32 0, %v107_v35  ;;  %v116_v39 = vsub.s32 2, %v107_v35  ;;  %p1308_p3 = scmp.lt.s32.totalorder %s1306_s27, %s1302_s26 }
  0x4e   :  { %v878_v35 = vstv %s1414_s6 }
  0x4f   :  { %p1309_p4 = por %p1308_p3, %p1307_p2 }
  0x50   :  { %789 = vmatpush1.bf16.msra.mxu0 %v1148_v40  ;;  %832 = vmatpush1.bf16.msra.mxu1 %v1151_v41  ;;  %v104_v40 = vld [vmem:[%s1410_s2] sm:$0xf] }
  0x51   :  { %790 = vmatprep.subr.bf16.mxu0 %v1156_v42  ;;  %833 = vmatprep.subr.bf16.mxu1 %v1159_v43  ;;  %v113_v43 = vrot.slane %v104_v40, %v112_v36  ;;  %p1310_p5 = pnand %p1309_p4, %p1303_p1 }
  0x54   :  { %791 = vmatpush1.bf16.msra.mxu0 %v1154_v44  ;;  %834 = vmatpush1.bf16.msra.mxu1 %v1157_v45  ;;  %v121_v44 = vrot.slane %v104_v40, %v120_v37  ;;  %v109_v45 = vrot.slane %v104_v40, %v1388_v38 }
  0x55   :  { %792 = vmatprep.subr.bf16.mxu0 %v1162_v46  ;;  %835 = vmatprep.subr.bf16.mxu1 %v1165_v47  ;;  %v117_v46 = vrot.slane %v104_v40, %v116_v39 }
  0x58   :  { %793 = vmatpush1.bf16.msra.mxu0 %v1160_v48  ;;  %836 = vmatpush1.bf16.msra.mxu1 %v1163_v49 }
  0x59   :  { %794 = vmatprep.subr.bf16.mxu0 %v1168_v50  ;;  %837 = vmatprep.subr.bf16.mxu1 %v1171_v51 }
  0x5c   :  { %795 = vmatpush1.bf16.msra.mxu0 %v1166_v52  ;;  %838 = vmatpush1.bf16.msra.mxu1 %v1169_v53 }
  0x5d   :  { %796 = vmatprep.subr.bf16.mxu0 %v1174_v54  ;;  %839 = vmatprep.subr.bf16.mxu1 %v1177_v55 }
  0x60   :  { %797 = vmatpush1.bf16.msra.mxu0 %v1172_v56  ;;  %840 = vmatpush1.bf16.msra.mxu1 %v1175_v57 }
  0x61   :  { %798 = vmatprep.subr.bf16.mxu0 %v1180_v58  ;;  %841 = vmatprep.subr.bf16.mxu1 %v1183_v59 }
  0x64   :  { %799 = vmatpush1.bf16.msra.mxu0 %v1178_v60  ;;  %842 = vmatpush1.bf16.msra.mxu1 %v1181_v61 }
  0x65   :  { %800 = vmatprep.subr.bf16.mxu0 %v1186_v62  ;;  %843 = vmatprep.subr.bf16.mxu1 %v1189_v63 }
  0x68   :  { %801 = vmatpush1.bf16.msra.mxu0 %v1184_v0  ;;  %844 = vmatpush1.bf16.msra.mxu1 %v1187_v1 }
  0x69   :  { %802 = vmatprep.subr.bf16.mxu0 %v1192_v2  ;;  %845 = vmatprep.subr.bf16.mxu1 %v1195_v3 }
  0x6c   :  { %803 = vmatpush2.bf16.msra.mxu0 %v1190_v4  ;;  %846 = vmatpush2.bf16.msra.mxu1 %v1193_v5 }
  0x6d   :  { %804 = vmatprep.subr.bf16.mxu0 %v1198_v6  ;;  %847 = vmatprep.subr.bf16.mxu1 %v1201_v7 }
  0x70   :  { %805 = vmatpush2.bf16.msra.mxu0 %v1196_v8  ;;  %848 = vmatpush2.bf16.msra.mxu1 %v1199_v9  ;;  %v876_v9 = vld [vmem:[%s1413_s5] sm:$0x3] }
  0x71   :  { %806 = vmatprep.subr.bf16.mxu0 %v1204_v10  ;;  %849 = vmatprep.subr.bf16.mxu1 %v1207_v11  ;;  %v887_v10 = vrot.slane %v876_v9, %v112_v36  ;;  %v454_v11 = vld [vmem:[%s1412_s4] sm:$0x3]  ;;  %v883_v34 = vrot.slane %v876_v9, %v1388_v38 }
  0x74   :  { %807 = vmatpush2.bf16.msra.mxu0 %v1202_v12  ;;  %850 = vmatpush2.bf16.msra.mxu1 %v1205_v13 }
  0x75   :  { %808 = vmatprep.subr.bf16.mxu0 %v1210_v14  ;;  %851 = vmatprep.subr.bf16.mxu1 %v1213_v15  ;;  %v463_v14 = vrot.slane %v454_v11, %v112_v36 }
  0x78   :  { %809 = vmatpush2.bf16.msra.mxu0 %v1208_v16  ;;  %852 = vmatpush2.bf16.msra.mxu1 %v1211_v17  ;;  %v459_v17 = vrot.slane %v454_v11, %v1388_v38 }
  0x79   :  { %810 = vmatprep.subr.bf16.mxu0 %v1216_v18  ;;  %853 = vmatprep.subr.bf16.mxu1 %v1219_v19 }
  0x7c   :  { %811 = vmatpush2.bf16.msra.mxu0 %v1214_v20  ;;  %854 = vmatpush2.bf16.msra.mxu1 %v1217_v21 }
  0x7d   :  { %812 = vmatprep.subr.bf16.mxu0 %v1222_v22  ;;  %855 = vmatprep.subr.bf16.mxu1 %v1225_v23 }
  0x80   :  { %813 = vmatpush2.bf16.msra.mxu0 %v1220_v24  ;;  %856 = vmatpush2.bf16.msra.mxu1 %v1223_v25 }
  0x81   :  { %814 = vmatprep.subr.bf16.mxu0 %v1228_v26  ;;  %857 = vmatprep.subr.bf16.mxu1 %v1231_v27 }
  0x84   :  { %815 = vmatpush2.bf16.msra.mxu0 %v1226_v28  ;;  %858 = vmatpush2.bf16.msra.mxu1 %v1229_v29 }
  0x85   :  { %816 = vmatprep.subr.bf16.mxu0 %v1234_v30  ;;  %859 = vmatprep.subr.bf16.mxu1 %v1237_v31 }
  0x88   :  { %817 = vmatpush2.bf16.msra.mxu0 %v1232_v32  ;;  %860 = vmatpush2.bf16.msra.mxu1 %v1235_v33 }
 0x10b   :  { %v326_v41 = vpop.f32.mrf.mxu0  ;;  %v369_v42 = vpop.f32.mrf.mxu1 }
 0x10c   :  { %v327_v55 = vadd.f32 %v326_v41, %v109_v45  ;;  %v370_v56 = vadd.f32 %v369_v42, %v117_v46 }
 0x10d   :  { %v328_v47 = vpop.f32.mrf.mxu0  ;;  %v371_v48 = vpop.f32.mrf.mxu1 }
 0x10e   :  { %v329_v51 = vadd.f32 %v328_v47, %v113_v43  ;;  %v372_v52 = vadd.f32 %v371_v48, %v121_v44  ;;  %v378_v3 = vmax.f32 %v327_v55, 0.0  ;;  %v380_v4 = vmax.f32 %v370_v56, 0.0 }
 0x10f   :  { %v330_v49 = vpop.f32.mrf.mxu0  ;;  %v373_v50 = vpop.f32.mrf.mxu1 }
 0x110   :  { %v331_v53 = vadd.f32 %v330_v49, %v109_v45  ;;  %v374_v54 = vadd.f32 %v373_v50, %v117_v46  ;;  %v379_v63 = vmax.f32 %v329_v51, 0.0  ;;  %v381_v0 = vmax.f32 %v372_v52, 0.0 }
 0x111   :  { %v332_v57 = vpop.f32.mrf.mxu0  ;;  %v375_v58 = vpop.f32.mrf.mxu1 }
 0x112   :  { %v333_v59 = vadd.f32 %v332_v57, %v113_v43  ;;  %v376_v60 = vadd.f32 %v375_v58, %v121_v44  ;;  %v382_v61 = vmax.f32 %v331_v53, 0.0  ;;  %v384_v62 = vmax.f32 %v374_v54, 0.0 }
 0x114   :  { %v383_v1 = vmax.f32 %v333_v59, 0.0  ;;  %v385_v2 = vmax.f32 %v376_v60, 0.0  ;;  %v386_v7 = vpack.c.bf16 %v382_v61, %v378_v3  ;;  %v388_v8 = vpack.c.bf16 %v384_v62, %v380_v4 }
 0x116   :  { %v387_v5 = vpack.c.bf16 %v383_v1, %v379_v63  ;;  %v389_v6 = vpack.c.bf16 %v385_v2, %v381_v0 }
 0x118   :  { %818 = vmatprep.mubr.bf16.mxu0 %v387_v5  ;;  %861 = vmatprep.mubr.bf16.mxu1 %v389_v6 }
 0x119   :  { %819 = vmatmul.mubr.bf16.vlgmr.msra.gmra.mxu0 %v386_v7  ;;  %862 = vmatmul.mubr.bf16.vlgmr.msra.gmra.mxu1 %v388_v8 }
 0x11a   :  { %954 = vmatprep.mubr.f32.mxu0 %v887_v10 }
 0x1d9   :  { %v820_v12 = vpop.f32.mrf.mxu0  ;;  %v863_v13 = vpop.f32.mrf.mxu1 }
 0x1da   :  { %v821_v24 = vadd.f32 %v820_v12, %v459_v17 }
 0x1db   :  { %v822_v15 = vpop.f32.mrf.mxu0  ;;  %v865_v16 = vpop.f32.mrf.mxu1 }
 0x1dc   :  { %v823_v20 = vadd.f32 %v822_v15, %v463_v14  ;;  %v864_v30 = vadd.f32 %v863_v13, %v821_v24 }
 0x1dd   :  { %v824_v18 = vpop.f32.mrf.mxu0  ;;  %v867_v19 = vpop.f32.mrf.mxu1 }
 0x1de   :  { %v825_v21 = vadd.f32 %v824_v18, %v459_v17  ;;  %v866_v27 = vadd.f32 %v865_v16, %v823_v20  ;;  %v872_v33 = vmax.f32 %v864_v30, 0.0 }
 0x1df   :  { %v826_v22 = vpop.f32.mrf.mxu0  ;;  %v869_v26 = vpop.f32.mrf.mxu1 }
 0x1e0   :  { %v827_v23 = vadd.f32 %v826_v22, %v463_v14  ;;  %v868_v25 = vadd.f32 %v867_v19, %v825_v21  ;;  %v873_v32 = vmax.f32 %v866_v27, 0.0 }
 0x1e2   :  { %v870_v28 = vadd.f32 %v869_v26, %v827_v23  ;;  %v874_v31 = vmax.f32 %v868_v25, 0.0 }
 0x1e4   :  { %v875_v29 = vmax.f32 %v870_v28, 0.0 }
 0x1e6   :  { %918 = vmatprep.subr.mxu0 %v875_v29 }
 0x1e7   :  { %919 = vmatpush1.xpose.msra.mxu0 %v874_v31 }
 0x1e8   :  { %920 = vmatprep.subr.mxu0 %v873_v32 }
 0x1eb   :  { %921 = vmatpush1.xpose.msra.mxu0 %v872_v33 }
 0x1ee   :  { %955 = vmatmul.mubr.f32.vlgmr.msra.gmra.mxu0 %v883_v34 }
 0x2ae   :  { %v956_v36 = vpop.f32.mrf.mxu0 }
 0x2af   :  { %v957_v37 = vadd.f32 %v956_v36, %v878_v35 }
 0x2b0   :  { %v958_v39 = vpop.f32.mrf.mxu0 }
 0x2b1   :  { %v1081_v40 = vmul.f32 -1.442695, %v957_v37 }
 0x2b3   :  { %1238 = vpow2.f32 %v1081_v40 }
 0x2c0   :  { %v1239_v41 = vpop.eup %1238 }
 0x2c1   :  { %v963_v42 = vadd.f32 1.0, %v1239_v41 }
 0x2c3   :  { %1240 = vrcp.f32 %v963_v42 }
 0x2d0   :  { %v1241_v43 = vpop.eup %1240 }
 0x2d1   :  { %967 = vst.msk [vmem:[#allocation9] sm:$0x1] %vm966_vm0, %v1241_v43 }
 0x2d2   :  { %1313 = shalt.err (!%p1310_p5)
}
 0x2d3   :  { %977 = dma.vmem_to_hbm [thread:$0]  %s975_s25, 16, %s1415_s7, [#allocation5]  }
 0x2d4   :  { %1326 = dma.done.wait [#allocation5], 16  }
 0x2d5   :  { %1327 = vsyncadd [#allocation5], 4294967280 }
 0x2d6   :  { %981 = vsyncpa [#allocation4], 1 }
 0x2d7   :  { %982 = vsyncpa [#allocation7], 1 }
 0x2d8   :  { %983 = vsyncpa [#allocation5], 1 }

</bundles_post_ra>
